<compile_context>
chip_gen: v7x
topology: tpu7x:2x2x1
jax: 0.10.0
libtpu: 0.0.40
codegen_flags: <defaults>
</compile_context>

<pallas_src>
import jax
import jax.numpy as jnp
from jax.experimental import pallas as pl
from jax.experimental.pallas import tpu as pltpu

HIDDEN = 10            # fc1 output features
LANE = 128             # TPU lane width
SUBLANE = 8            # f32 sublanes per vreg
MIN_PAD = LANE * SUBLANE   # pad batch to a multiple of 1024 -> full vregs
TR_MAX = 2048          # max rows per block: 2048*128*4B = 1 MiB per buffer


def mlp_kernel(w1_ref, b1_ref, w2_ref, b2_ref, x_ref, o_ref):
    """Fused Linear(1->10) + ReLU + Linear(10->1), batch packed on (sublane, lane).

    w1/b1/w2/b2 are SMEM scalar-prefetch refs; x_ref/o_ref are (TR, 128)
    VMEM tiles.  Everything is scalar-broadcast VPU math (static 10-way unroll).
    """
    x = x_ref[...]                                      # (TR, 128) f32
    acc = jnp.full(x.shape, b2_ref[0], dtype=x.dtype)   # fc2 bias, broadcast
    for j in range(HIDDEN):                             # static unroll
        h = jnp.maximum(x * w1_ref[j] + b1_ref[j], 0.0)     # fc1 row j + ReLU
        acc = acc + h * w2_ref[j]                            # fc2 reduction (VPU)
    o_ref[...] = acc.astype(o_ref.dtype)


def _round_up(n, m):
    return ((n + m - 1) // m) * m


def _tile_map(i, w1_s, b1_s, w2_s, b2_s):
    # Scalar-prefetch refs arrive as trailing positional args; unused here.
    return (i, 0)


@jax.jit
def mlp_forward(x, w1, b1, w2, b2):
    """x: (B, 1). w1: (10, 1), b1: (10,), w2: (1, 10), b2: (1,) — PyTorch layout."""
    B = x.shape[0]

    # Pad batch so it reshapes into fully packed (rows, 128) f32 tiles.
    b_pad = _round_up(B, MIN_PAD)
    rows = b_pad // LANE
    if rows <= TR_MAX:
        tr = rows
    else:
        rows = _round_up(rows, TR_MAX)
        b_pad = rows * LANE
        tr = TR_MAX

    x_flat = jnp.pad(x.astype(jnp.float32).reshape(B), (0, b_pad - B))
    x_tiles = x_flat.reshape(rows, LANE)                # row-major, contiguous DMA

    # Flatten weights; they are prefetched into SMEM (scalar operands).
    w1_s = w1.reshape(HIDDEN).astype(jnp.float32)       # fc1 weight column
    b1_s = b1.reshape(HIDDEN).astype(jnp.float32)
    w2_s = w2.reshape(HIDDEN).astype(jnp.float32)       # fc2 weight row
    b2_s = b2.reshape(1).astype(jnp.float32)

    out = pl.pallas_call(
        mlp_kernel,
        out_shape=jax.ShapeDtypeStruct((rows, LANE), jnp.float32),
        grid_spec=pltpu.PrefetchScalarGridSpec(
            num_scalar_prefetch=4,
            grid=(rows // tr,),
            in_specs=[pl.BlockSpec((tr, LANE), _tile_map)],
            out_specs=pl.BlockSpec((tr, LANE), _tile_map),
        ),
        compiler_params=pltpu.CompilerParams(
            dimension_semantics=("parallel",)),   # shard batch tiles across cores
    )(w1_s, b1_s, w2_s, b2_s, x_tiles)

    return out.reshape(b_pad)[:B].reshape(B, 1)


def init_params(key):
    """Deterministic init mimicking nn.Linear's uniform(-1/sqrt(fan_in), ...)."""
    k1, k2, k3, k4 = jax.random.split(key, 4)
    bound1 = 1.0 / jnp.sqrt(1.0)     # fc1 fan_in = 1
    bound2 = 1.0 / jnp.sqrt(10.0)    # fc2 fan_in = 10
    w1 = jax.random.uniform(k1, (HIDDEN, 1), jnp.float32, -bound1, bound1)
    b1 = jax.random.uniform(k2, (HIDDEN,), jnp.float32, -bound1, bound1)
    w2 = jax.random.uniform(k3, (1, HIDDEN), jnp.float32, -bound2, bound2)
    b2 = jax.random.uniform(k4, (1,), jnp.float32, -bound2, bound2)
    return w1, b1, w2, b2


if __name__ == "__main__":
    key = jax.random.PRNGKey(0)
    k_params, k_x = jax.random.split(key)
    w1, b1, w2, b2 = init_params(k_params)

    # Small batch matching the module spec (B, 1).
    B = 8
    x = jax.random.normal(k_x, (B, 1), jnp.float32)
    out = mlp_forward(x, w1, b1, w2, b2)
    jax.block_until_ready(out)

    ref = jnp.maximum(x @ w1.T + b1, 0.0) @ w2.T + b2
    assert out.shape == (B, 1)
    assert jnp.allclose(out, ref, atol=1e-5, rtol=1e-5)

    # Also exercise padding (B not a multiple of 1024).
    B2 = 300
    x2 = jax.random.normal(jax.random.PRNGKey(1), (B2, 1), jnp.float32)
    out2 = mlp_forward(x2, w1, b1, w2, b2)
    jax.block_until_ready(out2)
    ref2 = jnp.maximum(x2 @ w1.T + b1, 0.0) @ w2.T + b2
    assert out2.shape == (B2, 1)
    assert jnp.allclose(out2, ref2, atol=1e-5, rtol=1e-5)

    print("KERNEL_OK")
</pallas_src>

<mosaic_0001>
module attributes {stable_mosaic.version = 11 : i64} {
  func.func @mlp_kernel(%arg0: i32, %arg1: memref<10xf32, #tpu.memory_space<smem>>, %arg2: memref<10xf32, #tpu.memory_space<smem>>, %arg3: memref<10xf32, #tpu.memory_space<smem>>, %arg4: memref<1xf32, #tpu.memory_space<smem>>, %arg5: memref<8x128xf32, #tpu.memory_space<vmem>>, %arg6: memref<8x128xf32, #tpu.memory_space<vmem>>) attributes {dimension_semantics = [#tpu.dimension_semantics<parallel>], iteration_bounds = array<i64: 1>, scalar_prefetch = 4 : i64, scratch_operands = 0 : i64, tpu.core_type = #tpu.core_type<tc>, window_params = [{transform_indices = @transform_0, window_bounds = array<i64: 8, 128>}, {transform_indices = @transform_1, window_bounds = array<i64: 8, 128>}]} {
    %c0 = arith.constant 0 : index
    %c0_0 = arith.constant 0 : index
    %0 = vector.load %arg5[%c0, %c0_0] : memref<8x128xf32, #tpu.memory_space<vmem>>, vector<8x128xf32>
    %c0_1 = arith.constant 0 : index
    %1 = memref.load %arg4[%c0_1] : memref<1xf32, #tpu.memory_space<smem>>
    %2 = vector.broadcast %1 : f32 to vector<8x128xf32>
    %c0_2 = arith.constant 0 : index
    %3 = memref.load %arg1[%c0_2] : memref<10xf32, #tpu.memory_space<smem>>
    %4 = vector.broadcast %3 : f32 to vector<8x128xf32>
    %5 = arith.mulf %0, %4 : vector<8x128xf32>
    %c0_3 = arith.constant 0 : index
    %6 = memref.load %arg2[%c0_3] : memref<10xf32, #tpu.memory_space<smem>>
    %7 = vector.broadcast %6 : f32 to vector<8x128xf32>
    %8 = arith.addf %5, %7 : vector<8x128xf32>
    %cst = arith.constant 0.000000e+00 : f32
    %9 = vector.broadcast %cst : f32 to vector<8x128xf32>
    %10 = arith.maximumf %8, %9 : vector<8x128xf32>
    %c0_4 = arith.constant 0 : index
    %11 = memref.load %arg3[%c0_4] : memref<10xf32, #tpu.memory_space<smem>>
    %12 = vector.broadcast %11 : f32 to vector<8x128xf32>
    %13 = arith.mulf %10, %12 : vector<8x128xf32>
    %14 = arith.addf %2, %13 : vector<8x128xf32>
    %c1 = arith.constant 1 : index
    %15 = memref.load %arg1[%c1] : memref<10xf32, #tpu.memory_space<smem>>
    %16 = vector.broadcast %15 : f32 to vector<8x128xf32>
    %17 = arith.mulf %0, %16 : vector<8x128xf32>
    %c1_5 = arith.constant 1 : index
    %18 = memref.load %arg2[%c1_5] : memref<10xf32, #tpu.memory_space<smem>>
    %19 = vector.broadcast %18 : f32 to vector<8x128xf32>
    %20 = arith.addf %17, %19 : vector<8x128xf32>
    %cst_6 = arith.constant 0.000000e+00 : f32
    %21 = vector.broadcast %cst_6 : f32 to vector<8x128xf32>
    %22 = arith.maximumf %20, %21 : vector<8x128xf32>
    %c1_7 = arith.constant 1 : index
    %23 = memref.load %arg3[%c1_7] : memref<10xf32, #tpu.memory_space<smem>>
    %24 = vector.broadcast %23 : f32 to vector<8x128xf32>
    %25 = arith.mulf %22, %24 : vector<8x128xf32>
    %26 = arith.addf %14, %25 : vector<8x128xf32>
    %c2 = arith.constant 2 : index
    %27 = memref.load %arg1[%c2] : memref<10xf32, #tpu.memory_space<smem>>
    %28 = vector.broadcast %27 : f32 to vector<8x128xf32>
    %29 = arith.mulf %0, %28 : vector<8x128xf32>
    %c2_8 = arith.constant 2 : index
    %30 = memref.load %arg2[%c2_8] : memref<10xf32, #tpu.memory_space<smem>>
    %31 = vector.broadcast %30 : f32 to vector<8x128xf32>
    %32 = arith.addf %29, %31 : vector<8x128xf32>
    %cst_9 = arith.constant 0.000000e+00 : f32
    %33 = vector.broadcast %cst_9 : f32 to vector<8x128xf32>
    %34 = arith.maximumf %32, %33 : vector<8x128xf32>
    %c2_10 = arith.constant 2 : index
    %35 = memref.load %arg3[%c2_10] : memref<10xf32, #tpu.memory_space<smem>>
    %36 = vector.broadcast %35 : f32 to vector<8x128xf32>
    %37 = arith.mulf %34, %36 : vector<8x128xf32>
    %38 = arith.addf %26, %37 : vector<8x128xf32>
    %c3 = arith.constant 3 : index
    %39 = memref.load %arg1[%c3] : memref<10xf32, #tpu.memory_space<smem>>
    %40 = vector.broadcast %39 : f32 to vector<8x128xf32>
    %41 = arith.mulf %0, %40 : vector<8x128xf32>
    %c3_11 = arith.constant 3 : index
    %42 = memref.load %arg2[%c3_11] : memref<10xf32, #tpu.memory_space<smem>>
    %43 = vector.broadcast %42 : f32 to vector<8x128xf32>
    %44 = arith.addf %41, %43 : vector<8x128xf32>
    %cst_12 = arith.constant 0.000000e+00 : f32
    %45 = vector.broadcast %cst_12 : f32 to vector<8x128xf32>
    %46 = arith.maximumf %44, %45 : vector<8x128xf32>
    %c3_13 = arith.constant 3 : index
    %47 = memref.load %arg3[%c3_13] : memref<10xf32, #tpu.memory_space<smem>>
    %48 = vector.broadcast %47 : f32 to vector<8x128xf32>
    %49 = arith.mulf %46, %48 : vector<8x128xf32>
    %50 = arith.addf %38, %49 : vector<8x128xf32>
    %c4 = arith.constant 4 : index
    %51 = memref.load %arg1[%c4] : memref<10xf32, #tpu.memory_space<smem>>
    %52 = vector.broadcast %51 : f32 to vector<8x128xf32>
    %53 = arith.mulf %0, %52 : vector<8x128xf32>
    %c4_14 = arith.constant 4 : index
    %54 = memref.load %arg2[%c4_14] : memref<10xf32, #tpu.memory_space<smem>>
    %55 = vector.broadcast %54 : f32 to vector<8x128xf32>
    %56 = arith.addf %53, %55 : vector<8x128xf32>
    %cst_15 = arith.constant 0.000000e+00 : f32
    %57 = vector.broadcast %cst_15 : f32 to vector<8x128xf32>
    %58 = arith.maximumf %56, %57 : vector<8x128xf32>
    %c4_16 = arith.constant 4 : index
    %59 = memref.load %arg3[%c4_16] : memref<10xf32, #tpu.memory_space<smem>>
    %60 = vector.broadcast %59 : f32 to vector<8x128xf32>
    %61 = arith.mulf %58, %60 : vector<8x128xf32>
    %62 = arith.addf %50, %61 : vector<8x128xf32>
    %c5 = arith.constant 5 : index
    %63 = memref.load %arg1[%c5] : memref<10xf32, #tpu.memory_space<smem>>
    %64 = vector.broadcast %63 : f32 to vector<8x128xf32>
    %65 = arith.mulf %0, %64 : vector<8x128xf32>
    %c5_17 = arith.constant 5 : index
    %66 = memref.load %arg2[%c5_17] : memref<10xf32, #tpu.memory_space<smem>>
    %67 = vector.broadcast %66 : f32 to vector<8x128xf32>
    %68 = arith.addf %65, %67 : vector<8x128xf32>
    %cst_18 = arith.constant 0.000000e+00 : f32
    %69 = vector.broadcast %cst_18 : f32 to vector<8x128xf32>
    %70 = arith.maximumf %68, %69 : vector<8x128xf32>
    %c5_19 = arith.constant 5 : index
    %71 = memref.load %arg3[%c5_19] : memref<10xf32, #tpu.memory_space<smem>>
    %72 = vector.broadcast %71 : f32 to vector<8x128xf32>
    %73 = arith.mulf %70, %72 : vector<8x128xf32>
    %74 = arith.addf %62, %73 : vector<8x128xf32>
    %c6 = arith.constant 6 : index
    %75 = memref.load %arg1[%c6] : memref<10xf32, #tpu.memory_space<smem>>
    %76 = vector.broadcast %75 : f32 to vector<8x128xf32>
    %77 = arith.mulf %0, %76 : vector<8x128xf32>
    %c6_20 = arith.constant 6 : index
    %78 = memref.load %arg2[%c6_20] : memref<10xf32, #tpu.memory_space<smem>>
    %79 = vector.broadcast %78 : f32 to vector<8x128xf32>
    %80 = arith.addf %77, %79 : vector<8x128xf32>
    %cst_21 = arith.constant 0.000000e+00 : f32
    %81 = vector.broadcast %cst_21 : f32 to vector<8x128xf32>
    %82 = arith.maximumf %80, %81 : vector<8x128xf32>
    %c6_22 = arith.constant 6 : index
    %83 = memref.load %arg3[%c6_22] : memref<10xf32, #tpu.memory_space<smem>>
    %84 = vector.broadcast %83 : f32 to vector<8x128xf32>
    %85 = arith.mulf %82, %84 : vector<8x128xf32>
    %86 = arith.addf %74, %85 : vector<8x128xf32>
    %c7 = arith.constant 7 : index
    %87 = memref.load %arg1[%c7] : memref<10xf32, #tpu.memory_space<smem>>
    %88 = vector.broadcast %87 : f32 to vector<8x128xf32>
    %89 = arith.mulf %0, %88 : vector<8x128xf32>
    %c7_23 = arith.constant 7 : index
    %90 = memref.load %arg2[%c7_23] : memref<10xf32, #tpu.memory_space<smem>>
    %91 = vector.broadcast %90 : f32 to vector<8x128xf32>
    %92 = arith.addf %89, %91 : vector<8x128xf32>
    %cst_24 = arith.constant 0.000000e+00 : f32
    %93 = vector.broadcast %cst_24 : f32 to vector<8x128xf32>
    %94 = arith.maximumf %92, %93 : vector<8x128xf32>
    %c7_25 = arith.constant 7 : index
    %95 = memref.load %arg3[%c7_25] : memref<10xf32, #tpu.memory_space<smem>>
    %96 = vector.broadcast %95 : f32 to vector<8x128xf32>
    %97 = arith.mulf %94, %96 : vector<8x128xf32>
    %98 = arith.addf %86, %97 : vector<8x128xf32>
    %c8 = arith.constant 8 : index
    %99 = memref.load %arg1[%c8] : memref<10xf32, #tpu.memory_space<smem>>
    %100 = vector.broadcast %99 : f32 to vector<8x128xf32>
    %101 = arith.mulf %0, %100 : vector<8x128xf32>
    %c8_26 = arith.constant 8 : index
    %102 = memref.load %arg2[%c8_26] : memref<10xf32, #tpu.memory_space<smem>>
    %103 = vector.broadcast %102 : f32 to vector<8x128xf32>
    %104 = arith.addf %101, %103 : vector<8x128xf32>
    %cst_27 = arith.constant 0.000000e+00 : f32
    %105 = vector.broadcast %cst_27 : f32 to vector<8x128xf32>
    %106 = arith.maximumf %104, %105 : vector<8x128xf32>
    %c8_28 = arith.constant 8 : index
    %107 = memref.load %arg3[%c8_28] : memref<10xf32, #tpu.memory_space<smem>>
    %108 = vector.broadcast %107 : f32 to vector<8x128xf32>
    %109 = arith.mulf %106, %108 : vector<8x128xf32>
    %110 = arith.addf %98, %109 : vector<8x128xf32>
    %c9 = arith.constant 9 : index
    %111 = memref.load %arg1[%c9] : memref<10xf32, #tpu.memory_space<smem>>
    %112 = vector.broadcast %111 : f32 to vector<8x128xf32>
    %113 = arith.mulf %0, %112 : vector<8x128xf32>
    %c9_29 = arith.constant 9 : index
    %114 = memref.load %arg2[%c9_29] : memref<10xf32, #tpu.memory_space<smem>>
    %115 = vector.broadcast %114 : f32 to vector<8x128xf32>
    %116 = arith.addf %113, %115 : vector<8x128xf32>
    %cst_30 = arith.constant 0.000000e+00 : f32
    %117 = vector.broadcast %cst_30 : f32 to vector<8x128xf32>
    %118 = arith.maximumf %116, %117 : vector<8x128xf32>
    %c9_31 = arith.constant 9 : index
    %119 = memref.load %arg3[%c9_31] : memref<10xf32, #tpu.memory_space<smem>>
    %120 = vector.broadcast %119 : f32 to vector<8x128xf32>
    %121 = arith.mulf %118, %120 : vector<8x128xf32>
    %122 = arith.addf %110, %121 : vector<8x128xf32>
    %c0_32 = arith.constant 0 : index
    %c0_33 = arith.constant 0 : index
    %123 = vector.load %arg6[%c0_32, %c0_33] : memref<8x128xf32, #tpu.memory_space<vmem>>, vector<8x128xf32>
    tpu.vector_store %arg6[%c0_32, %c0_33], %122 {strides = array<i32>} : memref<8x128xf32, #tpu.memory_space<vmem>>, vector<8x128xf32>,
    return
  }
  func.func @transform_0(%arg0: i32, %arg1: memref<10xf32, #tpu.memory_space<smem>>, %arg2: memref<10xf32, #tpu.memory_space<smem>>, %arg3: memref<10xf32, #tpu.memory_space<smem>>, %arg4: memref<1xf32, #tpu.memory_space<smem>>) -> (i32, i32) {
    %c0_i32 = arith.constant 0 : i32
    %c0_i32_0 = arith.constant 0 : i32
    return %arg0, %c0_i32 : i32, i32
  }
  func.func @transform_1(%arg0: i32, %arg1: memref<10xf32, #tpu.memory_space<smem>>, %arg2: memref<10xf32, #tpu.memory_space<smem>>, %arg3: memref<10xf32, #tpu.memory_space<smem>>, %arg4: memref<1xf32, #tpu.memory_space<smem>>) -> (i32, i32) {
    %c0_i32 = arith.constant 0 : i32
    %c0_i32_0 = arith.constant 0 : i32
    return %arg0, %c0_i32 : i32, i32
  }
}

</mosaic_0001>

<bundles_post_ra>
// kernel: mlp_forward.1
= control target key start
LH: loop header
LB: loop body
LE: loop exit
PB: predicated region body
PF: predicated region fallthrough
CT: control target
= control target key end

     0   :  { %s348_s0 = inlined_call_operand.vmem [shape: f32[10], index: 0, kind: input, shape index: {}]   ;;  %s349_s3 = inlined_call_operand.<no memory space> [shape: f32[1], index: 3, kind: input, shape index: {}]   ;;  %s350_s4 = inlined_call_operand.vmem [shape: f32[8,128], index: 4, kind: input, shape index: {}]   ;;  %s351_s5 = inlined_call_operand.vmem [shape: f32[8,128], index: 5, kind: output, shape index: {}]   ;;  %s352_s1 = inlined_call_operand.vmem [shape: f32[10], index: 1, kind: input, shape index: {}]   ;;  %s353_s2 = inlined_call_operand.vmem [shape: f32[10], index: 2, kind: input, shape index: {}]  }
   0x1   :  { %s10_s20 = sshll.u32 %s348_s0, 4  ;;  %s14_s23 = sshll.u32 %s352_s1, 4  ;;  %s11_s20 = int_to_ptr.vmem [resolvable:$true] %s10_s20  ;;  %s15_s23 = int_to_ptr.vmem [resolvable:$true] %s14_s23 }
   0x2   :  { %s175_s24 = scalar_lea.vmem %s11_s20, 16  ;;  %p180_p1 = scmp.lt.s32.totalorder %s11_s20, %s11_s20 }
   0x3   :  { %p176_p0 = scmp.ne.s32.totalorder %s11_s20, %s175_s24  ;;  %p181_p2 = scmp.lt.s32.totalorder %s175_s24, %s175_s24 }
   0x5   :  { %p182_p3 = por %p181_p2, %p180_p1 }
   0x7   :  { %p183_p4 = pnand %p182_p3, %p176_p0 }
   0x9   :  { %186 = shalt.err (!%p183_p4)  }
   0xa   :  { %s213_s25 = smov [#allocation3]   ;;  %s187_s26 = scalar_lea.vmem %s15_s23, 16 }
   0xb   :  { %13 = dma.vmem_to_smem %s11_s20, 16, %s213_s25, [#allocation2] }
   0xc   :  { %p188_p5 = scmp.ne.s32.totalorder %s15_s23, %s187_s26  ;;  %p192_p6 = scmp.lt.s32.totalorder %s15_s23, %s15_s23 }
   0xd   :  { %p193_p7 = scmp.lt.s32.totalorder %s187_s26, %s187_s26 }
   0xf   :  { %p194_p8 = por %p193_p7, %p192_p6 }
  0x11   :  { %p195_p9 = pnand %p194_p8, %p188_p5 }
  0x13   :  { %198 = shalt.err (!%p195_p9)  }
  0x14   :  { %s214_s0 = smov [#allocation4]   ;;  %s18_s28 = sshll.u32 %s353_s2, 4  ;;  %s19_s28 = int_to_ptr.vmem [resolvable:$true] %s18_s28 }
  0x15   :  { %17 = dma.vmem_to_smem %s15_s23, 16, %s214_s0, [#allocation2] }
  0x16   :  { %s199_s29 = scalar_lea.vmem %s19_s28, 16  ;;  %p204_p11 = scmp.lt.s32.totalorder %s19_s28, %s19_s28 }
  0x17   :  { %p200_p10 = scmp.ne.s32.totalorder %s19_s28, %s199_s29  ;;  %p205_p12 = scmp.lt.s32.totalorder %s199_s29, %s199_s29 }
  0x19   :  { %p206_p13 = por %p205_p12, %p204_p11 }
  0x1b   :  { %p207_p0 = pnand %p206_p13, %p200_p10 }
  0x1d   :  { %210 = shalt.err (!%p207_p0)  }
  0x1e   :  { %s215_s30 = smov [#allocation5]  }
  0x1f   :  { %21 = dma.vmem_to_smem %s19_s28, 16, %s215_s30, [#allocation2] }
  0x20   :  { %211 = dma.done.wait [#allocation2], 48 }
  0x21   :  { %212 = vsyncadd [#allocation2], 4294967248 }
  0x22   :  { %24 = sfence }
  0x23   :  { %s30_s6 = sld [smem:[#allocation3]]  ;;  %s145_s9 = sld [smem:[#allocation3 + $0x1]]  ;;  %v264_v0 = vld [vmem:[%s350_s4] sm:$0xff]  ;;  %v29_v5 = vstv %s349_s3 }
  0x24   :  { %s33_s7 = sld [smem:[#allocation4]]  ;;  %s146_s10 = sld [smem:[#allocation4 + $0x1]] }
  0x25   :  { %s255_s8 = sld [smem:[#allocation5]]  ;;  %s257_s2 = sld [smem:[#allocation5 + $0x1]] }
  0x26   :  { %s148_s11 = sld [smem:[#allocation3 + $0x2]]  ;;  %s151_s16 = sld [smem:[#allocation3 + $0x3]] }
  0x27   :  { %s259_s12 = sld [smem:[#allocation4 + $0x2]]  ;;  %s268_s17 = sld [smem:[#allocation4 + $0x3]] }
  0x28   :  { %s266_s15 = sld [smem:[#allocation5 + $0x2]]  ;;  %s270_s18 = sld [smem:[#allocation5 + $0x3]] }
  0x29   :  { %v31_v1 = vstv %s30_s6  ;;  %s272_s19 = sld [smem:[#allocation3 + $0x4]]  ;;  %v42_v4 = vstv %s145_s9  ;;  %s277_s4 = sld [smem:[#allocation3 + $0x5]] }
  0x2a   :  { %v34_v2 = vstv %s33_s7  ;;  %s274_s20 = sld [smem:[#allocation4 + $0x4]]  ;;  %v32_v3 = vmul.f32 %v31_v1, %v264_v0  ;;  %v43_v6 = vmul.f32 %v42_v4, %v264_v0  ;;  %v45_v7 = vstv %s146_s10  ;;  %s285_s24 = sld [smem:[#allocation4 + $0x5]] }
  0x2b   :  { %s283_s23 = sld [smem:[#allocation5 + $0x4]]  ;;  %v38_v9 = vstv %s255_s8  ;;  %s289_s25 = sld [smem:[#allocation3 + $0x6]]  ;;  %v49_v13 = vstv %s257_s2 }
  0x2c   :  { %v35_v8 = vadd.f32 %v34_v2, %v32_v3  ;;  %v53_v10 = vstv %s148_s11  ;;  %s291_s26 = sld [smem:[#allocation4 + $0x6]]  ;;  %v46_v12 = vadd.f32 %v45_v7, %v43_v6  ;;  %v64_v15 = vstv %s151_s16  ;;  %s295_s3 = sld [smem:[#allocation5 + $0x5]] }
  0x2d   :  { %v56_v11 = vstv %s259_s12  ;;  %v54_v14 = vmul.f32 %v53_v10, %v264_v0  ;;  %s297_s0 = sld [smem:[#allocation3 + $0x7]]  ;;  %v65_v18 = vmul.f32 %v64_v15, %v264_v0  ;;  %v67_v19 = vstv %s268_s17  ;;  %s302_s1 = sld [smem:[#allocation5 + $0x6]] }
  0x2e   :  { %v36_v16 = vmax.f32 %v35_v8, 0.0  ;;  %v60_v17 = vstv %s266_s15  ;;  %s304_s27 = sld [smem:[#allocation4 + $0x7]]  ;;  %v47_v20 = vmax.f32 %v46_v12, 0.0  ;;  %s308_s28 = sld [smem:[#allocation3 + $0x8]]  ;;  %v71_v26 = vstv %s270_s18 }
  0x2f   :  { %v57_v21 = vadd.f32 %v56_v11, %v54_v14  ;;  %v75_v22 = vstv %s272_s19  ;;  %s310_s29 = sld [smem:[#allocation4 + $0x8]]  ;;  %v68_v25 = vadd.f32 %v67_v19, %v65_v18  ;;  %s314_s30 = sld [smem:[#allocation5 + $0x7]]  ;;  %v86_v30 = vstv %s277_s4 }
  0x30   :  { %v78_v23 = vstv %s274_s20  ;;  %v39_v24 = vmul.f32 %v38_v9, %v36_v16  ;;  %v76_v27 = vmul.f32 %v75_v22, %v264_v0  ;;  %v50_v28 = vmul.f32 %v49_v13, %v47_v20  ;;  %s318_s6 = sld [smem:[#allocation3 + $0x9]]  ;;  %s326_s8 = sld [smem:[#allocation5 + $0x8]] }
  0x31   :  { %v58_v29 = vmax.f32 %v57_v21, 0.0  ;;  %v89_v31 = vstv %s285_s24  ;;  %s320_s7 = sld [smem:[#allocation4 + $0x9]]  ;;  %v69_v33 = vmax.f32 %v68_v25, 0.0  ;;  %v87_v35 = vmul.f32 %v86_v30, %v264_v0 }
  0x32   :  { %v40_v32 = vadd.f32 %v39_v24, %v29_v5  ;;  %v79_v34 = vadd.f32 %v78_v23, %v76_v27  ;;  %v82_v37 = vstv %s283_s23  ;;  %v97_v38 = vstv %s289_s25  ;;  %s332_s9 = sld [smem:[#allocation5 + $0x9]] }
  0x33   :  { %v61_v36 = vmul.f32 %v60_v17, %v58_v29  ;;  %v100_v39 = vstv %s291_s26  ;;  %v72_v41 = vmul.f32 %v71_v26, %v69_v33  ;;  %v90_v43 = vadd.f32 %v89_v31, %v87_v35 }
  0x34   :  { %v51_v40 = vadd.f32 %v50_v28, %v40_v32  ;;  %v80_v42 = vmax.f32 %v79_v34, 0.0  ;;  %v93_v44 = vstv %s295_s3  ;;  %v98_v45 = vmul.f32 %v97_v38, %v264_v0 }
  0x35   :  { %v108_v46 = vstv %s297_s0  ;;  %v111_v47 = vstv %s304_s27  ;;  %v91_v50 = vmax.f32 %v90_v43, 0.0  ;;  %v104_v53 = vstv %s302_s1 }
  0x36   :  { %v62_v48 = vadd.f32 %v61_v36, %v51_v40  ;;  %v83_v49 = vmul.f32 %v82_v37, %v80_v42  ;;  %v109_v51 = vmul.f32 %v108_v46, %v264_v0  ;;  %v101_v52 = vadd.f32 %v100_v39, %v98_v45 }
  0x37   :  { %v119_v54 = vstv %s308_s28  ;;  %v122_v55 = vstv %s310_s29  ;;  %v94_v57 = vmul.f32 %v93_v44, %v91_v50  ;;  %v115_v61 = vstv %s314_s30 }
  0x38   :  { %v73_v56 = vadd.f32 %v72_v41, %v62_v48  ;;  %v112_v58 = vadd.f32 %v111_v47, %v109_v51  ;;  %v120_v59 = vmul.f32 %v119_v54, %v264_v0  ;;  %v102_v60 = vmax.f32 %v101_v52, 0.0 }
  0x39   :  { %v130_v62 = vstv %s318_s6  ;;  %v133_v63 = vstv %s320_s7  ;;  %v126_v6 = vstv %s326_s8  ;;  %v137_v11 = vstv %s332_s9 }
  0x3a   :  { %v84_v1 = vadd.f32 %v83_v49, %v73_v56  ;;  %v113_v2 = vmax.f32 %v112_v58, 0.0  ;;  %v123_v3 = vadd.f32 %v122_v55, %v120_v59  ;;  %v131_v4 = vmul.f32 %v130_v62, %v264_v0 }
  0x3b   :  { %v105_v5 = vmul.f32 %v104_v53, %v102_v60 }
  0x3c   :  { %v95_v7 = vadd.f32 %v94_v57, %v84_v1  ;;  %v116_v8 = vmul.f32 %v115_v61, %v113_v2  ;;  %v124_v9 = vmax.f32 %v123_v3, 0.0  ;;  %v134_v10 = vadd.f32 %v133_v63, %v131_v4 }
  0x3e   :  { %v106_v12 = vadd.f32 %v105_v5, %v95_v7  ;;  %v127_v13 = vmul.f32 %v126_v6, %v124_v9  ;;  %v135_v14 = vmax.f32 %v134_v10, 0.0 }
  0x40   :  { %v117_v15 = vadd.f32 %v116_v8, %v106_v12  ;;  %v138_v16 = vmul.f32 %v137_v11, %v135_v14 }
  0x42   :  { %v128_v17 = vadd.f32 %v127_v13, %v117_v15 }
  0x44   :  { %v139_v18 = vadd.f32 %v138_v16, %v128_v17 }
  0x46   :  { %140 = vst [vmem:[%s351_s5] sm:$0xff] %v139_v18 }

</bundles_post_ra>
